<compile_context>
chip_gen: v6e
topology: v6e:2x2x1
jax: 0.10.0
libtpu: 0.0.40
codegen_flags: <defaults>
</compile_context>

<pallas_src>
import math

import jax
import jax.numpy as jnp
from jax.experimental import pallas as pl
from jax.experimental.pallas import tpu as pltpu


_MIN_GRID_STEPS = 8          # pipelining + both v7x TensorCores
_MIN_USEFUL_BYTES = 1 << 20  # stop shrinking blocks below ~1 MiB of real data
_STATIC_LOOP_MAX = 8         # unroll small per-block batch loops statically
_MAX_UNROLL = 128            # static-unroll cap for the rare generic paths

_FLAT_RELAYOUT_BROKEN = False  # set if Mosaic rejects the in-kernel relayout
_VMEM_BUDGET_CACHE = None


# --------------------------------------------------------------------------
# Small helpers
# --------------------------------------------------------------------------

def _round_up(x, m):
    return ((x + m - 1) // m) * m


def _sublane(itemsize):
    # Sublane tile: 8 for 32-bit, 16 for 16-bit, 32 for 8-bit dtypes.
    return 8 * max(1, 4 // max(1, itemsize))


def _is_concrete(x):
    try:
        return not isinstance(x, jax.core.Tracer)
    except AttributeError:  # very old/new jax.core layouts
        return False


def _vmem_budget():
    """(vmem_limit_bytes, per-buffer-set byte budget) for this TPU generation."""
    global _VMEM_BUDGET_CACHE
    if _VMEM_BUDGET_CACHE is None:
        phys = 64 * 1024 * 1024  # conservative default (v7x-sized)
        try:
            info = pltpu.get_tpu_info()
            phys = int(getattr(info, "vmem_capacity_bytes", phys)) or phys
        except Exception:
            pass
        # Raise the Mosaic scoped-VMEM default while keeping ~25% headroom
        # below physical capacity: ~96 MiB on v5e/v6e (128 MiB), ~48 MiB on
        # v7x (64 MiB).
        vmem_limit = min(phys * 3 // 4, 100 * 1024 * 1024)
        # Double-buffered working set (2 x (in + out)) capped at ~75% of that,
        # so one (in + out) buffer pair gets limit * 3 / 8 bytes.
        per_step = vmem_limit * 3 // 8
        _VMEM_BUDGET_CACHE = (int(vmem_limit), int(per_step))
    return _VMEM_BUDGET_CACHE


def _fit_tail(total, bytes_per_elem, per_step):
    """Largest tail tile (multiple of 128, or the full extent) within budget."""
    bytes_per_elem = max(1, bytes_per_elem)
    tt = max(128, (per_step // bytes_per_elem) // 128 * 128)
    if tt >= total:
        tt = total
    fits = _round_up(tt, 128) * bytes_per_elem <= per_step
    return int(tt), bool(fits)


# --------------------------------------------------------------------------
# Fast path: swap of the two trailing axes, tiled over batch and time.
# --------------------------------------------------------------------------

def _pick_tiles(B, M, N, itemsize, per_step, lane_dense, force_tt=None):
    """Choose (batch_tile bb, time_tile tt) for the trailing-axes swap.

    Maximizes the per-grid-step DMA size within the double-buffered VMEM budget
    (amortizing the ~0.35 us/step overhead), keeps tt a multiple of 128 lanes
    (or the full time extent), keeps the per-row read burst >= ~2 KiB (v5e),
    and keeps >= _MIN_GRID_STEPS grid steps so both v7x TensorCores stay busy.
    """
    sub = _sublane(itemsize)

    def pair(bb, tt):
        inb = bb * _round_up(M, sub) * _round_up(tt, 128) * itemsize
        if lane_dense:
            outb = _round_up(bb, sub) * _round_up(tt * M, 128) * itemsize
        else:
            outb = bb * _round_up(tt, sub) * _round_up(M, 128) * itemsize
        return inb + outb

    def row(tt):
        inb = _round_up(M, sub) * _round_up(tt, 128) * itemsize
        outb = (tt * M * itemsize if lane_dense
                else _round_up(tt, sub) * _round_up(M, 128) * itemsize)
        return inb + outb

    # ---- time tile --------------------------------------------------------
    if force_tt is not None:
        tt = max(128, (int(force_tt) // 128) * 128)
        if tt >= N or int(force_tt) >= N:
            tt = N
    elif pair(1, N) <= per_step:
        tt = N  # whole rows fit; batch blocking amortizes the step overhead
    else:
        tt = _round_up(N, 128)
        while tt > 128 and pair(1, tt) > per_step:
            tt = max(128, (tt // 2) // 128 * 128)
        if tt >= N:
            tt = N

    if force_tt is None:
        # Keep >= _MIN_GRID_STEPS steps even for a short batch axis, but never
        # drop the per-row read burst below ~2 KiB (v5e strided-read floor).
        min_tt = max(128, _round_up(-(-2048 // itemsize), 128))
        while B * pl.cdiv(N, tt) < _MIN_GRID_STEPS:
            nxt = (tt // 2) // 128 * 128
            if nxt < min_tt:
                break
            tt = nxt

    # ---- batch tile --------------------------------------------------------
    bb = max(1, min(B, per_step // max(1, row(tt))))
    while bb > 1 and pair(bb, tt) > per_step:
        bb = max(1, bb - max(1, bb // 8))
    while bb > 1 and pl.cdiv(B, bb) * pl.cdiv(N, tt) < _MIN_GRID_STEPS:
        nxt = bb // 2
        if nxt * M * min(tt, N) * itemsize < _MIN_USEFUL_BYTES:
            break
        bb = nxt
    if lane_dense and bb < B:
        # The flat output block puts bb on the sublane axis: it must be a
        # multiple of the sublane tile, or the full batch extent.
        bb = B if B <= sub else min(B, max(sub, (bb // sub) * sub))
    return int(bb), int(tt)


def _transpose_block_kernel(x_ref, o_ref):
    # x_ref: (bb, M, tt) -> o_ref: (bb, tt, M).  Per-row 2-D transposes lower
    # to XLU vxpose (its own VLIW slot), hidden under the HBM DMAs.
    bb = x_ref.shape[0]
    if bb <= _STATIC_LOOP_MAX:
        for i in range(bb):
            o_ref[i] = x_ref[i].T
    else:
        def body(i, carry):
            o_ref[i] = x_ref[i].T
            return carry
        jax.lax.fori_loop(0, bb, body, 0)


def _transpose_block_flat_kernel(x_ref, o_ref):
    # x_ref: (bb, M, tt) -> o_ref: (bb, tt*M).  Lane-dense flat rows:
    # o[b].reshape(tt, M) == x[b].T, so every VMEM store is a full 128-lane
    # vst and the writeback DMA reads a dense buffer.
    bb, m, tt = x_ref.shape
    if bb <= _STATIC_LOOP_MAX:
        for i in range(bb):
            o_ref[i] = x_ref[i].T.reshape(tt * m)
    else:
        def body(i, carry):
            o_ref[i] = x_ref[i].T.reshape(tt * m)
            return carry
        jax.lax.fori_loop(0, bb, body, 0)


def _transpose_last2_plain(x, bb, tt, vmem_limit):
    B, M, N = x.shape
    itemsize = jnp.dtype(x.dtype).itemsize
    return pl.pallas_call(
        _transpose_block_kernel,
        out_shape=jax.ShapeDtypeStruct((B, N, M), x.dtype),
        grid_spec=pltpu.PrefetchScalarGridSpec(
            num_scalar_prefetch=0,
            grid=(pl.cdiv(B, bb), pl.cdiv(N, tt)),
            in_specs=[pl.BlockSpec((bb, M, tt), lambda b, j: (b, 0, j))],
            # NOTE: for M < 128 this block's last dim forces masked stores and a
            # lane-padded VMEM buffer; the lane-dense flat path avoids that.
            out_specs=pl.BlockSpec((bb, tt, M), lambda b, j: (b, j, 0)),
        ),
        compiler_params=pltpu.CompilerParams(
            dimension_semantics=("parallel", "parallel"),
            vmem_limit_bytes=int(vmem_limit)),
        cost_estimate=pl.CostEstimate(
            flops=0, transcendentals=0, bytes_accessed=2 * x.size * itemsize),
    )(x)


def _transpose_last2_flat(x, bb, tt, vmem_limit):
    B, M, N = x.shape
    itemsize = jnp.dtype(x.dtype).itemsize
    y = pl.pallas_call(
        _transpose_block_flat_kernel,
        out_shape=jax.ShapeDtypeStruct((B, N * M), x.dtype),
        grid_spec=pltpu.PrefetchScalarGridSpec(
            num_scalar_prefetch=0,
            grid=(pl.cdiv(B, bb), pl.cdiv(N, tt)),
            # TODO(synk): if xprof still shows exposed input DMA after the tile
            # resize, bump the input BlockSpec to pipeline_mode=pl.Buffered(3).
            in_specs=[pl.BlockSpec((bb, M, tt), lambda b, j: (b, 0, j))],
            out_specs=pl.BlockSpec((bb, tt * M), lambda b, j: (b, j)),
        ),
        compiler_params=pltpu.CompilerParams(
            dimension_semantics=("parallel", "parallel"),
            vmem_limit_bytes=int(vmem_limit)),
        cost_estimate=pl.CostEstimate(
            flops=0, transcendentals=0, bytes_accessed=2 * x.size * itemsize),
    )(x)
    return y.reshape(B, N, M)  # free row-major metadata reshape outside Pallas


def _transpose_last2(x, *, time_tile=None, lane_dense=None):
    """(B, M, N) -> (B, N, M) via a batch/time-tiled Pallas kernel."""
    global _FLAT_RELAYOUT_BROKEN
    B, M, N = x.shape
    itemsize = jnp.dtype(x.dtype).itemsize
    vmem_limit, per_step = _vmem_budget()
    sub = _sublane(itemsize)

    # Extreme channel counts would also need the channel axis tiled.
    min_pair = (_round_up(M, sub) * 128 + 128 * _round_up(M, 128)) * itemsize
    if min_pair > per_step:
        # TODO(synk): tile the channel axis as well; punt to XLA for now.
        return jnp.swapaxes(x, 1, 2)

    auto = lane_dense is None
    want_flat = (bool(lane_dense) if not auto else
                 (M < 128 and not _FLAT_RELAYOUT_BROKEN and _is_concrete(x)))

    if want_flat:
        bb, tt = _pick_tiles(B, M, N, itemsize, per_step, lane_dense=True,
                             force_tt=time_tile)
        if not auto:
            return _transpose_last2_flat(x, bb, tt, vmem_limit)
        try:
            return _transpose_last2_flat(x, bb, tt, vmem_limit)
        except Exception:
            # This Mosaic build can't lower the (tt, M) -> (tt*M,) relayout;
            # fall back to the HBM-contiguous (lane-masked) layout.
            _FLAT_RELAYOUT_BROKEN = True

    bb, tt = _pick_tiles(B, M, N, itemsize, per_step, lane_dense=False,
                         force_tt=time_tile)
    return _transpose_last2_plain(x, bb, tt, vmem_limit)


# --------------------------------------------------------------------------
# Generic fallback 1: swap of the last axis with a non-adjacent axis.
# --------------------------------------------------------------------------

def _swap_with_last_kernel(x_ref, o_ref):
    # x_ref: (1, A, Mid, tt) ; o_ref: (1, tt, Mid, A)
    mid = x_ref.shape[2]
    for m in range(mid):  # static; bounded by _MAX_UNROLL / the VMEM budget
        o_ref[0, :, m, :] = x_ref[0, :, m, :].T


def _transpose_swap_with_last(x, d):
    """torch.transpose(x, d, -1) for d < ndim - 2 (rare path)."""
    shape, ndim = x.shape, x.ndim
    L = math.prod(shape[:d])
    A = shape[d]
    Mid = math.prod(shape[d + 1:ndim - 1])
    N = shape[-1]
    itemsize = jnp.dtype(x.dtype).itemsize
    out_full = shape[:d] + (N,) + shape[d + 1:ndim - 1] + (A,)

    vmem_limit, per_step = _vmem_budget()
    sub = _sublane(itemsize)
    in_per_t = A * _round_up(Mid, sub) * itemsize
    out_per_t = _round_up(Mid, sub) * _round_up(A, 128) * itemsize
    tt, fits = _fit_tail(N, in_per_t + out_per_t, per_step)
    if not fits or Mid > _MAX_UNROLL:
        # TODO(synk): tile the middle / swapped axes too instead of using XLA.
        return jnp.swapaxes(x, d, ndim - 1)

    xc = x.reshape(L, A, Mid, N)
    yc = pl.pallas_call(
        _swap_with_last_kernel,
        out_shape=jax.ShapeDtypeStruct((L, N, Mid, A), x.dtype),
        grid_spec=pltpu.PrefetchScalarGridSpec(
            num_scalar_prefetch=0,
            grid=(L, pl.cdiv(N, tt)),
            in_specs=[pl.BlockSpec((1, A, Mid, tt), lambda l, j: (l, 0, 0, j))],
            out_specs=pl.BlockSpec((1, tt, Mid, A), lambda l, j: (l, j, 0, 0)),
        ),
        compiler_params=pltpu.CompilerParams(
            dimension_semantics=("parallel", "parallel"),
            vmem_limit_bytes=int(vmem_limit)),
        cost_estimate=pl.CostEstimate(
            flops=0, transcendentals=0, bytes_accessed=2 * x.size * itemsize),
    )(xc)
    return yc.reshape(out_full)


# --------------------------------------------------------------------------
# Generic fallback 2: swap of two axes that do not include the last axis.
# --------------------------------------------------------------------------

def _leading_swap_kernel(x_ref, o_ref):
    # x_ref: (1, A, 1, Bx, tt); o_ref: (1, Bx, 1, A, tt).  Pure index shuffle of
    # lane-dense rows: no relayout of the tail axis is needed.
    a_dim, b_dim = x_ref.shape[1], x_ref.shape[3]
    if a_dim <= b_dim:
        for a in range(a_dim):
            o_ref[0, :, 0, a, :] = x_ref[0, a, 0, :, :]
    else:
        for b in range(b_dim):
            o_ref[0, b, 0, :, :] = x_ref[0, :, 0, b, :]


def _transpose_leading(x, d1, d2):
    """torch.transpose(x, d1, d2) where neither axis is the last one (rare)."""
    shape, ndim = x.shape, x.ndim
    L = math.prod(shape[:d1])
    A = shape[d1]
    Mid = math.prod(shape[d1 + 1:d2])
    Bx = shape[d2]
    T = math.prod(shape[d2 + 1:])
    itemsize = jnp.dtype(x.dtype).itemsize
    out_full = shape[:d1] + (Bx,) + shape[d1 + 1:d2] + (A,) + shape[d2 + 1:]

    vmem_limit, per_step = _vmem_budget()
    sub = _sublane(itemsize)
    in_per_t = A * _round_up(Bx, sub) * itemsize
    out_per_t = Bx * _round_up(A, sub) * itemsize
    tt, fits = _fit_tail(T, in_per_t + out_per_t, per_step)
    if not fits or min(A, Bx) > _MAX_UNROLL:
        # TODO(synk): also tile the swapped axes instead of punting to XLA.
        return jnp.swapaxes(x, d1, d2)

    xc = x.reshape(L, A, Mid, Bx, T)
    yc = pl.pallas_call(
        _leading_swap_kernel,
        out_shape=jax.ShapeDtypeStruct((L, Bx, Mid, A, T), x.dtype),
        grid_spec=pltpu.PrefetchScalarGridSpec(
            num_scalar_prefetch=0,
            grid=(L, Mid, pl.cdiv(T, tt)),
            in_specs=[pl.BlockSpec((1, A, 1, Bx, tt),
                                   lambda l, m, j: (l, 0, m, 0, j))],
            out_specs=pl.BlockSpec((1, Bx, 1, A, tt),
                                   lambda l, m, j: (l, 0, m, 0, j)),
        ),
        compiler_params=pltpu.CompilerParams(
            dimension_semantics=("parallel", "parallel", "parallel"),
            vmem_limit_bytes=int(vmem_limit)),
        cost_estimate=pl.CostEstimate(
            flops=0, transcendentals=0, bytes_accessed=2 * x.size * itemsize),
    )(xc)
    return yc.reshape(out_full)


# --------------------------------------------------------------------------
# Public wrapper (torch.transpose semantics).
# --------------------------------------------------------------------------

def pallas_transpose(x, dim1, dim2, *, time_tile=None, lane_dense=None):
    """Equivalent of ``torch.transpose(x, dim1, dim2)`` via Pallas TPU kernels.

    lane_dense: None  -> auto (concrete inputs with channels < 128 try the
                         lane-dense flat-output kernel, falling back if Mosaic
                         rejects the in-kernel relayout);
                True  -> force the lane-dense kernel (e.g. under jit);
                False -> always use the HBM-contiguous (lane-masked) layout.
    """
    ndim = x.ndim
    for d in (dim1, dim2):
        if not -ndim <= d < ndim:
            raise ValueError(f"transpose dim {d} out of range for rank {ndim}")
    d1 = dim1 % ndim
    d2 = dim2 % ndim
    if d1 == d2:
        return x  # identity: skip the kernel and the HBM round trip
    if x.size == 0:
        return jnp.swapaxes(x, d1, d2)

    lo, hi = (d1, d2) if d1 < d2 else (d2, d1)

    if lo == ndim - 2 and hi == ndim - 1:
        # pyannote's Transpose(1, 2) on (batch, channels, time), and any other
        # trailing-axes swap: collapse leading axes into one batch axis.
        lead = x.shape[:ndim - 2]
        M, N = x.shape[-2], x.shape[-1]
        L = math.prod(lead)
        y = _transpose_last2(x.reshape(L, M, N), time_tile=time_tile,
                             lane_dense=lane_dense)
        return y.reshape(lead + (N, M))

    if hi == ndim - 1:
        return _transpose_swap_with_last(x, lo)
    return _transpose_leading(x, lo, hi)


class Transpose:
    """JAX/Pallas mirror of pyannote.audio.utils.layer.Transpose."""

    def __init__(self, dim1, dim2):
        self.dim1 = dim1
        self.dim2 = dim2

    def __call__(self, x):
        return pallas_transpose(x, self.dim1, self.dim2)


if __name__ == "__main__":
    key = jax.random.PRNGKey(0)

    # Primary pyannote usage: Transpose(1, 2) on (batch, channels, time).
    x = jax.random.normal(key, (2, 4, 16), dtype=jnp.float32)
    module = Transpose(1, 2)
    out = jax.block_until_ready(module(x))
    assert out.shape == (2, 16, 4), out.shape
    assert out.dtype == x.dtype
    assert bool(jnp.array_equal(out, jnp.swapaxes(x, 1, 2))), "fast-path mismatch"

    # Multi-tile time axis (ragged last tile) with a forced/validated time tile.
    x2 = jax.random.normal(key, (2, 8, 400), dtype=jnp.float32)
    out2 = jax.block_until_ready(pallas_transpose(x2, 1, 2, time_tile=128))
    assert bool(jnp.array_equal(out2, jnp.swapaxes(x2, 1, 2))), "tiled mismatch"

    # Packed (bf16) dtype.
    x3 = jax.random.normal(key, (1, 16, 256)).astype(jnp.bfloat16)
    out3 = jax.block_until_ready(pallas_transpose(x3, 1, 2))
    assert bool(jnp.array_equal(out3, jnp.swapaxes(x3, 1, 2))), "bf16 mismatch"

    # Trailing swap on a 4-D tensor (leading axes collapsed into the batch).
    x4 = jax.random.normal(key, (2, 3, 8, 16), dtype=jnp.float32)
    out4 = jax.block_until_ready(pallas_transpose(x4, 2, 3))
    assert bool(jnp.array_equal(out4, jnp.swapaxes(x4, 2, 3))), "4-D mismatch"

    # Swap of two leading axes (tiled index-permutation copy kernel).
    x5 = jax.random.normal(key, (2, 3, 4, 128), dtype=jnp.float32)
    out5 = jax.block_until_ready(pallas_transpose(x5, 0, 1))
    assert bool(jnp.array_equal(out5, jnp.swapaxes(x5, 0, 1))), "leading mismatch"

    # Swap of the last axis with a non-adjacent axis.
    x6 = jax.random.normal(key, (2, 4, 3, 128), dtype=jnp.float32)
    out6 = jax.block_until_ready(pallas_transpose(x6, 1, 3))
    assert bool(jnp.array_equal(out6, jnp.swapaxes(x6, 1, 3))), "last-swap mismatch"

    # dim1 == dim2 is the identity and skips the kernel entirely.
    assert pallas_transpose(x, 1, 1) is x

    print("KERNEL_OK")
</pallas_src>

<mosaic_0001>
module attributes {stable_mosaic.version = 11 : i64} {
  func.func @_transpose_block_flat_kernel(%arg0: i32, %arg1: i32, %arg2: memref<2x4x16xf32, #tpu.memory_space<vmem>>, %arg3: memref<2x64xf32, #tpu.memory_space<vmem>>) attributes {dimension_semantics = [#tpu.dimension_semantics<parallel>, #tpu.dimension_semantics<parallel>], iteration_bounds = array<i64: 1, 1>, scalar_prefetch = 0 : i64, scratch_operands = 0 : i64, tpu.core_type = #tpu.core_type<tc>, window_params = [{transform_indices = @transform_0, window_bounds = array<i64: 2, 4, 16>}, {transform_indices = @transform_1, window_bounds = array<i64: 2, 64>}]} {
    %c0 = arith.constant 0 : index
    %c0_0 = arith.constant 0 : index
    %c0_1 = arith.constant 0 : index
    %0 = vector.load %arg2[%c0, %c0_0, %c0_1] : memref<2x4x16xf32, #tpu.memory_space<vmem>>, vector<1x4x16xf32>
    %1 = vector.shape_cast %0 : vector<1x4x16xf32> to vector<4x16xf32>
    %2 = tpu.transpose %1, [1, 0] : vector<4x16xf32> -> vector<16x4xf32>
    %3 = vector.shape_cast %2 : vector<16x4xf32> to vector<64xf32>
    %c0_2 = arith.constant 0 : index
    %c0_3 = arith.constant 0 : index
    %4 = vector.load %arg3[%c0_2, %c0_3] : memref<2x64xf32, #tpu.memory_space<vmem>>, vector<1x64xf32>
    %5 = vector.shape_cast %4 : vector<1x64xf32> to vector<64xf32>
    %6 = vector.shape_cast %3 : vector<64xf32> to vector<1x64xf32>
    tpu.vector_store %arg3[%c0_2, %c0_3], %6 {strides = array<i32>} : memref<2x64xf32, #tpu.memory_space<vmem>>, vector<1x64xf32>,
    %c1 = arith.constant 1 : index
    %c0_4 = arith.constant 0 : index
    %c0_5 = arith.constant 0 : index
    %7 = vector.load %arg2[%c1, %c0_4, %c0_5] : memref<2x4x16xf32, #tpu.memory_space<vmem>>, vector<1x4x16xf32>
    %8 = vector.shape_cast %7 : vector<1x4x16xf32> to vector<4x16xf32>
    %9 = tpu.transpose %8, [1, 0] : vector<4x16xf32> -> vector<16x4xf32>
    %10 = vector.shape_cast %9 : vector<16x4xf32> to vector<64xf32>
    %c1_6 = arith.constant 1 : index
    %c0_7 = arith.constant 0 : index
    %11 = vector.load %arg3[%c1_6, %c0_7] : memref<2x64xf32, #tpu.memory_space<vmem>>, vector<1x64xf32>
    %12 = vector.shape_cast %11 : vector<1x64xf32> to vector<64xf32>
    %13 = vector.shape_cast %10 : vector<64xf32> to vector<1x64xf32>
    tpu.vector_store %arg3[%c1_6, %c0_7], %13 {strides = array<i32>} : memref<2x64xf32, #tpu.memory_space<vmem>>, vector<1x64xf32>,
    return
  }
  func.func @transform_0(%arg0: i32, %arg1: i32) -> (i32, i32, i32) {
    %c0_i32 = arith.constant 0 : i32
    %c0_i32_0 = arith.constant 0 : i32
    return %arg0, %c0_i32, %arg1 : i32, i32, i32
  }
  func.func @transform_1(%arg0: i32, %arg1: i32) -> (i32, i32) {
    %c0_i32 = arith.constant 0 : i32
    return %arg0, %arg1 : i32, i32
  }
}

module attributes {stable_mosaic.version = 11 : i64} {
  func.func @_transpose_block_kernel(%arg0: i32, %arg1: i32, %arg2: memref<2x4x16xf32, #tpu.memory_space<vmem>>, %arg3: memref<2x16x4xf32, #tpu.memory_space<vmem>>) attributes {dimension_semantics = [#tpu.dimension_semantics<parallel>, #tpu.dimension_semantics<parallel>], iteration_bounds = array<i64: 1, 1>, scalar_prefetch = 0 : i64, scratch_operands = 0 : i64, tpu.core_type = #tpu.core_type<tc>, window_params = [{transform_indices = @transform_0, window_bounds = array<i64: 2, 4, 16>}, {transform_indices = @transform_1, window_bounds = array<i64: 2, 16, 4>}]} {
    %c0 = arith.constant 0 : index
    %c0_0 = arith.constant 0 : index
    %c0_1 = arith.constant 0 : index
    %0 = vector.load %arg2[%c0, %c0_0, %c0_1] : memref<2x4x16xf32, #tpu.memory_space<vmem>>, vector<1x4x16xf32>
    %1 = vector.shape_cast %0 : vector<1x4x16xf32> to vector<4x16xf32>
    %2 = tpu.transpose %1, [1, 0] : vector<4x16xf32> -> vector<16x4xf32>
    %c0_2 = arith.constant 0 : index
    %c0_3 = arith.constant 0 : index
    %c0_4 = arith.constant 0 : index
    %3 = vector.load %arg3[%c0_2, %c0_3, %c0_4] : memref<2x16x4xf32, #tpu.memory_space<vmem>>, vector<1x16x4xf32>
    %4 = vector.shape_cast %3 : vector<1x16x4xf32> to vector<16x4xf32>
    %5 = vector.shape_cast %2 : vector<16x4xf32> to vector<1x16x4xf32>
    tpu.vector_store %arg3[%c0_2, %c0_3, %c0_4], %5 {strides = array<i32>} : memref<2x16x4xf32, #tpu.memory_space<vmem>>, vector<1x16x4xf32>,
    %c1 = arith.constant 1 : index
    %c0_5 = arith.constant 0 : index
    %c0_6 = arith.constant 0 : index
    %6 = vector.load %arg2[%c1, %c0_5, %c0_6] : memref<2x4x16xf32, #tpu.memory_space<vmem>>, vector<1x4x16xf32>
    %7 = vector.shape_cast %6 : vector<1x4x16xf32> to vector<4x16xf32>
    %8 = tpu.transpose %7, [1, 0] : vector<4x16xf32> -> vector<16x4xf32>
    %c1_7 = arith.constant 1 : index
    %c0_8 = arith.constant 0 : index
    %c0_9 = arith.constant 0 : index
    %9 = vector.load %arg3[%c1_7, %c0_8, %c0_9] : memref<2x16x4xf32, #tpu.memory_space<vmem>>, vector<1x16x4xf32>
    %10 = vector.shape_cast %9 : vector<1x16x4xf32> to vector<16x4xf32>
    %11 = vector.shape_cast %8 : vector<16x4xf32> to vector<1x16x4xf32>
    tpu.vector_store %arg3[%c1_7, %c0_8, %c0_9], %11 {strides = array<i32>} : memref<2x16x4xf32, #tpu.memory_space<vmem>>, vector<1x16x4xf32>,
    return
  }
  func.func @transform_0(%arg0: i32, %arg1: i32) -> (i32, i32, i32) {
    %c0_i32 = arith.constant 0 : i32
    %c0_i32_0 = arith.constant 0 : i32
    return %arg0, %c0_i32, %arg1 : i32, i32, i32
  }
  func.func @transform_1(%arg0: i32, %arg1: i32) -> (i32, i32, i32) {
    %c0_i32 = arith.constant 0 : i32
    %c0_i32_0 = arith.constant 0 : i32
    return %arg0, %arg1, %c0_i32 : i32, i32, i32
  }
}

</mosaic_0001>

<bundles_post_ra>
// kernel: tpu_custom_call.1
= control target key start
LH: loop header
LB: loop body
LE: loop exit
PB: predicated region body
PF: predicated region fallthrough
CT: control target
= control target key end

     0   :  { %6 = vsyncpa [#allocation3], 0  ;;  %s128_s6 = smov [#allocation2]   ;;  %s156_s0 = inlined_call_operand.hbm [shape: f32[2,4,16], index: 0, kind: input, shape index: {}]   ;;  %s157_s1 = inlined_call_operand.vmem [shape: f32[2,16,4], index: 1, kind: output, shape index: {}]  }
   0x1   :  { %s12_s7 = sshll.u32 %s128_s6, 4  ;;  %s13_s7 = int_to_ptr.vmem [resolvable:$true] %s12_s7 }
   0x2   :  { %s114_s8 = scalar_lea.vmem %s13_s7, 128  ;;  %p119_p1 = scmp.lt.s32.totalorder %s13_s7, %s13_s7 }
   0x3   :  { %p115_p0 = scmp.ne.s32.totalorder %s13_s7, %s114_s8  ;;  %p120_p2 = scmp.lt.s32.totalorder %s114_s8, %s114_s8 }
   0x5   :  { %p121_p3 = por %p120_p2, %p119_p1 }
   0x7   :  { %p122_p4 = pnand %p121_p3, %p115_p0 }
   0x9   :  { %125 = shalt.err (!%p122_p4)
}
   0xa   :  { %s129_s9 = smov 64   ;;  %s130_s10 = smov 4  }
   0xb   :  { %18 = dma.hbm_to_vmem [thread:$0]  %s156_s0, 128, %s13_s7, [#allocation3], %s129_s9, %s129_s9, %s130_s10  }
   0xc   :  { %126 = dma.done.wait [#allocation3], 128  }
   0xd   :  { %127 = vsyncadd [#allocation3], 4294967168  ;;  %v22_v0 = vld [vmem:[#allocation2] sm:$0xf]  ;;  %v59_v1 = vld [vmem:[#allocation2 + $0x4] sm:$0xf] }
   0xe   :  { %23 = vxpose.xlu0.b32.start.end [1/1] (short) (narrow) %v22_v0, 16  ;;  %vm55_vm0 = vcmask 31744  }
  0x13   :  { %60 = vxpose.xlu0.b32.start.end [1/1] (short) (narrow) %v59_v1, 16 }
  0x8a   :  { %v39_v2 = vpop.trf.xlu0 }
  0x8b   :  { %56 = vst.msk [vmem:[%s157_s1] sm:$0xff] %vm55_vm0, %v39_v2 }
  0x8e   :  { %v40_v3 = vpop.trf.xlu0 }
  0x8f   :  { %57 = vst.msk [vmem:[%s157_s1 + $0x8] sm:$0xff] %vm55_vm0, %v40_v3 }
  0x92   :  { %v76_v4 = vpop.trf.xlu0 }
  0x93   :  { %100 = vst.msk [vmem:[%s157_s1 + $0x10] sm:$0xff] %vm55_vm0, %v76_v4 }
  0x96   :  { %v77_v5 = vpop.trf.xlu0 }
  0x97   :  { %101 = vst.msk [vmem:[%s157_s1 + $0x18] sm:$0xff] %vm55_vm0, %v77_v5 }
  0x98   :  { %99 = vsyncpa [#allocation3], 1 }

</bundles_post_ra>
